<compile_context>
chip_gen: v7x
topology: tpu7x:2x2x1
jax: 0.10.0
libtpu: 0.0.40
codegen_flags: <defaults>
</compile_context>

<pallas_src>
import functools

import jax
import jax.numpy as jnp
import numpy as np
from jax.experimental import pallas as pl
from jax.experimental.pallas import tpu as pltpu


# ----------------------------------------------------------------------------
# Parameter / buffer construction (glue, plain JAX) -- matches __init__
# ----------------------------------------------------------------------------
def make_positional_encoding(model_dim: int, max_len: int = 5000) -> jnp.ndarray:
    position = np.arange(0, max_len, dtype=np.float32)[:, None]              # (max_len, 1)
    div_term = np.exp(
        np.arange(0, model_dim, 2, dtype=np.float32) * (-np.log(10000.0) / model_dim)
    )                                                                        # (model_dim/2,)
    pe = np.zeros((max_len, model_dim), dtype=np.float32)
    pe[:, 0::2] = np.sin(position * div_term)
    pe[:, 1::2] = np.cos(position * div_term)
    pe = pe[:, None, :]                                                      # (max_len, 1, model_dim)
    return jnp.asarray(pe)


# ----------------------------------------------------------------------------
# Kernels
# ----------------------------------------------------------------------------
def _add_pe_kernel(x_ref, pe_ref, o_ref):
    # x_ref: (TS, B, D), pe_ref: (TS, 1, D) -> broadcast add over the batch axis.
    o_ref[...] = x_ref[...] + pe_ref[...]


def _add_pe_dropout_kernel(seed_ref, x_ref, pe_ref, o_ref, *, p: float, tile_rows: int):
    # Training-mode (inverted) dropout applied after the positional-encoding add.
    y = x_ref[...] + pe_ref[...]                                             # (TS, B, D) f32
    ts, b, d = y.shape

    # Global element index of every element in this tile (unique across the grid).
    row0 = (pl.program_id(0) * tile_rows).astype(jnp.uint32)
    row = jax.lax.broadcasted_iota(jnp.uint32, (ts, b, d), 0) + row0
    bat = jax.lax.broadcasted_iota(jnp.uint32, (ts, b, d), 1)
    col = jax.lax.broadcasted_iota(jnp.uint32, (ts, b, d), 2)
    gidx = (row * jnp.uint32(b) + bat) * jnp.uint32(d) + col

    # Stateless 32-bit mixer (lowbias32) keyed by (seed, element index).
    seed_u = seed_ref[0].astype(jnp.uint32)
    h = gidx ^ (seed_u * jnp.uint32(0x9E3779B9))
    h = (h ^ (h >> 16)) * jnp.uint32(0x7FEB352D)
    h = (h ^ (h >> 15)) * jnp.uint32(0x846CA68B)
    h = h ^ (h >> 16)

    # Drop iff h < round(p * 2^32): integer threshold, no float-uniform construction.
    threshold = jnp.uint32(min(int(round(p * (1 << 32))), (1 << 32) - 1))
    keep = h >= threshold
    scale = jnp.float32(1.0 / (1.0 - p))
    o_ref[...] = jnp.where(keep, y * scale, jnp.zeros_like(y)).astype(o_ref.dtype)


# ----------------------------------------------------------------------------
# Wrapper
# ----------------------------------------------------------------------------
def _choose_tile_rows(seq_len: int, batch: int, model_dim: int, itemsize: int) -> int:
    # Working set per sequence row: x tile + out tile + pe tile, double-buffered.
    bytes_per_row = (2 * batch * model_dim + model_dim) * itemsize
    budget = 16 * 1024 * 1024                       # conservative: fits every generation
    ts = max(1, budget // (2 * bytes_per_row))
    if ts >= seq_len:
        return seq_len
    if ts >= 8:
        ts = (ts // 8) * 8
    return ts


def positional_encoding_forward(x, pe, *, p: float = 0.0, training: bool = False,
                                seed: int = 0, tile_rows=None):
    """x: (S, B, D) float32; pe: (max_len, 1, D). Returns dropout(x + pe[:S])."""
    S, B, D = x.shape
    assert pe.ndim == 3 and pe.shape[1] == 1 and pe.shape[2] == D and pe.shape[0] >= S

    if tile_rows is None:
        ts = _choose_tile_rows(S, B, D, jnp.dtype(x.dtype).itemsize)
    else:
        ts = int(tile_rows)
    ts = int(min(max(ts, 1), S))
    grid = (pl.cdiv(S, ts),)

    out_shape = jax.ShapeDtypeStruct((S, B, D), x.dtype)
    compiler_params = pltpu.CompilerParams(
        dimension_semantics=("parallel",),          # shard tiles across v7x's 2 TCs
        vmem_limit_bytes=48 * 1024 * 1024,          # < 64 MiB physical on v7x, ample on v5e/v6e
    )

    if (not training) or p == 0.0:
        return pl.pallas_call(
            _add_pe_kernel,
            out_shape=out_shape,
            grid_spec=pltpu.PrefetchScalarGridSpec(
                num_scalar_prefetch=0,
                grid=grid,
                in_specs=[
                    pl.BlockSpec((ts, B, D), lambda i: (i, 0, 0)),
                    pl.BlockSpec((ts, 1, D), lambda i: (i, 0, 0)),   # rows of the full pe buffer
                ],
                out_specs=pl.BlockSpec((ts, B, D), lambda i: (i, 0, 0)),
            ),
            compiler_params=compiler_params,
        )(x, pe)

    seed_arr = jnp.array([int(seed)], dtype=jnp.int32)
    kernel = functools.partial(_add_pe_dropout_kernel, p=float(p), tile_rows=ts)
    return pl.pallas_call(
        kernel,
        out_shape=out_shape,
        grid_spec=pltpu.PrefetchScalarGridSpec(
            num_scalar_prefetch=1,
            grid=grid,
            in_specs=[
                pl.BlockSpec((ts, B, D), lambda i, seed_ref: (i, 0, 0)),
                pl.BlockSpec((ts, 1, D), lambda i, seed_ref: (i, 0, 0)),
            ],
            out_specs=pl.BlockSpec((ts, B, D), lambda i, seed_ref: (i, 0, 0)),
        ),
        compiler_params=compiler_params,
    )(seed_arr, x, pe)


# ----------------------------------------------------------------------------
# Main
# ----------------------------------------------------------------------------
if __name__ == "__main__":
    model_dim = 32
    max_len = 64
    seq_len = 8
    batch = 2
    dropout_p = 0.1

    key = jax.random.PRNGKey(0)
    x = jax.random.normal(key, (seq_len, batch, model_dim), dtype=jnp.float32)
    pe = make_positional_encoding(model_dim, max_len)
    ref = np.asarray(x) + np.asarray(pe[:seq_len])

    # 1) Eval mode (dropout is identity) -- single-tile grid.
    out_eval = jax.block_until_ready(
        positional_encoding_forward(x, pe, p=dropout_p, training=False))
    assert out_eval.shape == (seq_len, batch, model_dim)
    assert np.allclose(np.asarray(out_eval), ref, atol=1e-6), "eval mismatch"

    # 2) Eval mode with a multi-step, uneven grid -- exercises tiling + pe BlockSpec indexing.
    out_tiled = jax.block_until_ready(
        positional_encoding_forward(x, pe, p=dropout_p, training=False, tile_rows=3))
    assert np.allclose(np.asarray(out_tiled), ref, atol=1e-6), "tiled eval mismatch"

    # 3) Training mode: in-kernel inverted dropout over a 2-row-tile grid.
    out_train = jax.block_until_ready(
        positional_encoding_forward(x, pe, p=dropout_p, training=True, seed=123, tile_rows=2))
    out_train_np = np.asarray(out_train)
    assert out_train.shape == (seq_len, batch, model_dim)
    kept = out_train_np != 0.0
    scaled_ref = ref / (1.0 - dropout_p)
    assert np.allclose(out_train_np[kept], scaled_ref[kept], atol=1e-5), "train kept mismatch"
    n_drop = int((~kept).sum())
    assert 0 < n_drop < kept.size, "dropout mask degenerate"

    # Determinism for a fixed seed (stateless hash PRNG).
    out_train2 = jax.block_until_ready(
        positional_encoding_forward(x, pe, p=dropout_p, training=True, seed=123, tile_rows=2))
    assert np.array_equal(out_train_np, np.asarray(out_train2)), "dropout not deterministic"

    print("KERNEL_OK")
</pallas_src>

<mosaic_0001>
module attributes {stable_mosaic.version = 11 : i64} {
  func.func @_add_pe_kernel(%arg0: i32, %arg1: memref<8x2x32xf32, #tpu.memory_space<vmem>>, %arg2: memref<8x1x32xf32, #tpu.memory_space<vmem>>, %arg3: memref<8x2x32xf32, #tpu.memory_space<vmem>>) attributes {dimension_semantics = [#tpu.dimension_semantics<parallel>], iteration_bounds = array<i64: 1>, scalar_prefetch = 0 : i64, scratch_operands = 0 : i64, tpu.core_type = #tpu.core_type<tc>, window_params = [{transform_indices = @transform_0, window_bounds = array<i64: 8, 2, 32>}, {transform_indices = @transform_1, window_bounds = array<i64: 8, 1, 32>}, {transform_indices = @transform_2, window_bounds = array<i64: 8, 2, 32>}]} {
    %c0 = arith.constant 0 : index
    %c0_0 = arith.constant 0 : index
    %c0_1 = arith.constant 0 : index
    %0 = vector.load %arg1[%c0, %c0_0, %c0_1] : memref<8x2x32xf32, #tpu.memory_space<vmem>>, vector<8x2x32xf32>
    %c0_2 = arith.constant 0 : index
    %c0_3 = arith.constant 0 : index
    %c0_4 = arith.constant 0 : index
    %1 = vector.load %arg2[%c0_2, %c0_3, %c0_4] : memref<8x1x32xf32, #tpu.memory_space<vmem>>, vector<8x1x32xf32>
    %2 = vector.broadcast %1 : vector<8x1x32xf32> to vector<8x2x32xf32>
    %3 = arith.addf %0, %2 : vector<8x2x32xf32>
    %c0_5 = arith.constant 0 : index
    %c0_6 = arith.constant 0 : index
    %c0_7 = arith.constant 0 : index
    %4 = vector.load %arg3[%c0_5, %c0_6, %c0_7] : memref<8x2x32xf32, #tpu.memory_space<vmem>>, vector<8x2x32xf32>
    tpu.vector_store %arg3[%c0_5, %c0_6, %c0_7], %3 {strides = array<i32>} : memref<8x2x32xf32, #tpu.memory_space<vmem>>, vector<8x2x32xf32>,
    return
  }
  func.func @transform_0(%arg0: i32) -> (i32, i32, i32) {
    %c0_i32 = arith.constant 0 : i32
    %c0_i32_0 = arith.constant 0 : i32
    %c0_i32_1 = arith.constant 0 : i32
    return %arg0, %c0_i32, %c0_i32_0 : i32, i32, i32
  }
  func.func @transform_1(%arg0: i32) -> (i32, i32, i32) {
    %c0_i32 = arith.constant 0 : i32
    %c0_i32_0 = arith.constant 0 : i32
    %c0_i32_1 = arith.constant 0 : i32
    return %arg0, %c0_i32, %c0_i32_0 : i32, i32, i32
  }
  func.func @transform_2(%arg0: i32) -> (i32, i32, i32) {
    %c0_i32 = arith.constant 0 : i32
    %c0_i32_0 = arith.constant 0 : i32
    %c0_i32_1 = arith.constant 0 : i32
    return %arg0, %c0_i32, %c0_i32_0 : i32, i32, i32
  }
}

</mosaic_0001>

<bundles_post_ra>
// kernel: tpu_custom_call.1
= control target key start
LH: loop header
LB: loop body
LE: loop exit
PB: predicated region body
PF: predicated region fallthrough
CT: control target
= control target key end

     0   :  { %vm84_vm0 = vcmask 254976   ;;  %s230_s0 = inlined_call_operand.vmem [shape: f32[8,2,32], index: 0, kind: input, shape index: {}]   ;;  %s231_s1 = inlined_call_operand.vmem [shape: f32[64,1,32], index: 1, kind: input, shape index: {}]   ;;  %s232_s2 = inlined_call_operand.hbm [shape: f32[8,2,32], index: 2, kind: output, shape index: {}]  }
   0x1   :  { %v12_v0 = vld [vmem:[%s230_s0] sm:$0x3]  ;;  %v13_v3 = vld [vmem:[%s230_s0 + $0x2] sm:$0x3]  ;;  %v14_v5 = vld [vmem:[%s230_s0 + $0x4] sm:$0x3] }
   0x2   :  { %v109_v1 = vld [vmem:[%s231_s1] ss:$0 sm:$0xff]  ;;  %v110_v4 = vld [vmem:[%s231_s1 + $0x1] ss:$0 sm:$0xff]  ;;  %v111_v7 = vld [vmem:[%s231_s1 + $0x2] ss:$0 sm:$0xff] }
   0x3   :  { %v76_v2 = vadd.f32 %v109_v1, %v12_v0  ;;  %v77_v6 = vadd.f32 %v110_v4, %v13_v3  ;;  %v15_v8 = vld [vmem:[%s230_s0 + $0x6] sm:$0x3]  ;;  %v112_v9 = vld [vmem:[%s231_s1 + $0x3] ss:$0 sm:$0xff]  ;;  %v78_v10 = vadd.f32 %v111_v7, %v14_v5  ;;  %v16_v12 = vld [vmem:[%s230_s0 + $0x8] sm:$0x3] }
   0x4   :  { %v79_v11 = vadd.f32 %v112_v9, %v15_v8  ;;  %v113_v13 = vld [vmem:[%s231_s1 + $0x4] ss:$0 sm:$0xff]  ;;  %v17_v14 = vld [vmem:[%s230_s0 + $0xa] sm:$0x3]  ;;  %v114_v16 = vld [vmem:[%s231_s1 + $0x5] ss:$0 sm:$0xff] }
   0x5   :  { %85 = vst.msk [vmem:[#allocation2] sm:$0x3] %vm84_vm0, %v76_v2  ;;  %86 = vst.msk [vmem:[#allocation2 + $0x2] sm:$0x3] %vm84_vm0, %v77_v6  ;;  %v80_v15 = vadd.f32 %v113_v13, %v16_v12  ;;  %v18_v17 = vld [vmem:[%s230_s0 + $0xc] sm:$0x3]  ;;  %v81_v19 = vadd.f32 %v114_v16, %v17_v14 }
   0x6   :  { %v115_v18 = vld [vmem:[%s231_s1 + $0x6] ss:$0 sm:$0xff]  ;;  %87 = vst.msk [vmem:[#allocation2 + $0x4] sm:$0x3] %vm84_vm0, %v78_v10  ;;  %88 = vst.msk [vmem:[#allocation2 + $0x6] sm:$0x3] %vm84_vm0, %v79_v11 }
   0x7   :  { %v82_v20 = vadd.f32 %v115_v18, %v18_v17  ;;  %v19_v21 = vld [vmem:[%s230_s0 + $0xe] sm:$0x3]  ;;  %v116_v22 = vld [vmem:[%s231_s1 + $0x7] ss:$0 sm:$0xff] }
   0x8   :  { %7 = vsyncpa [#allocation3], 0  ;;  %89 = vst.msk [vmem:[#allocation2 + $0x8] sm:$0x3] %vm84_vm0, %v80_v15  ;;  %v83_v23 = vadd.f32 %v116_v22, %v19_v21  ;;  %s144_s13 = smov [#allocation2]  }
   0x9   :  { %s98_s14 = sshll.u32 %s144_s13, 4  ;;  %90 = vst.msk [vmem:[#allocation2 + $0xa] sm:$0x3] %vm84_vm0, %v81_v19  ;;  %91 = vst.msk [vmem:[#allocation2 + $0xc] sm:$0x3] %vm84_vm0, %v82_v20  ;;  %s99_s14 = int_to_ptr.vmem [resolvable:$true] %s98_s14 }
   0xa   :  { %92 = vst.msk [vmem:[#allocation2 + $0xe] sm:$0x3] %vm84_vm0, %v83_v23  ;;  %s120_s15 = scalar_lea.vmem %s99_s14, 256  ;;  %p125_p1 = scmp.lt.s32.totalorder %s99_s14, %s99_s14 }
   0xb   :  { %p121_p0 = scmp.ne.s32.totalorder %s99_s14, %s120_s15  ;;  %p126_p2 = scmp.lt.s32.totalorder %s120_s15, %s120_s15 }
   0xd   :  { %p127_p3 = por %p126_p2, %p125_p1 }
   0xf   :  { %p128_p4 = pnand %p127_p3, %p121_p0 }
  0x11   :  { %131 = shalt.err (!%p128_p4)
}
  0x12   :  { %s132_s16 = scalar_lea.hbm %s232_s2, 256 }
  0x13   :  { %p133_p5 = scmp.ne.s32.totalorder %s232_s2, %s132_s16  ;;  %p136_p6 = scmp.lt.u32.totalorder %s132_s16, %s232_s2 }
  0x15   :  { %p138_p7 = pnand %p136_p6, %p133_p5 }
  0x17   :  { %141 = shalt.err (!%p138_p7)
}
  0x18   :  { %s145_s21 = smov 32   ;;  %s146_s22 = smov 2  }
  0x19   :  { %104 = dma.vmem_to_hbm [thread:$0]  %s99_s14, 256, %s232_s2, [#allocation3], %s145_s21, %s145_s21, %s146_s22  }
  0x1a   :  { %142 = dma.done.wait [#allocation3], 256  }
  0x1b   :  { %143 = vsyncadd [#allocation3], 4294967040 }
  0x1c   :  { %108 = vsyncpa [#allocation3], 1 }

</bundles_post_ra>
